<compile_context>
chip_gen: v5e
topology: v5e:2x2
jax: 0.10.0
libtpu: 0.0.40
codegen_flags: <defaults>
</compile_context>

<pallas_src>
import functools

import jax
import jax.numpy as jnp
from jax.experimental import pallas as pl
from jax.experimental.pallas import tpu as pltpu

_LANES = 128
_MAX_ROW_TILE = 2048   # (2048, 128) f32 = 1 MiB per input block per grid step
_ROW_ALIGN = 32        # int8 target stream wants 32-row sublane granules


def _round_up(x, m):
    return (x + m - 1) // m * m


@functools.lru_cache(maxsize=None)
def _tensorcores_per_chip():
    """Best-effort TensorCore count per chip (2 on v7x, 1 on v5e/v6e)."""
    try:
        info = pltpu.get_tpu_info()
        for attr in ("num_cores", "core_count", "tensorcore_count",
                     "num_tensorcores", "cores_per_chip"):
            val = getattr(info, attr, None)
            if isinstance(val, int) and val > 0:
                return min(int(val), 2)
    except Exception:
        pass
    try:
        kind = jax.devices()[0].device_kind.lower()
        if "v7" in kind or "7x" in kind or "v4" in kind:
            return 2
    except Exception:
        pass
    return 1


def _pow_modulator(d, gamma):
    """d**gamma; repeated multiplication for small integer gamma (no EUP pow)."""
    g = float(gamma)
    if g.is_integer() and 0 <= int(g) <= 16:
        gi = int(g)
        if gi == 0:
            return jnp.ones_like(d)
        result = None
        base = d
        while gi:
            if gi & 1:
                result = base if result is None else result * base
            gi >>= 1
            if gi:
                base = base * base
        return result
    # TODO(synk): non-integer gamma with a negative (1 - pt) base produces NaN
    # (pow lowers to exp(gamma*log(x))); only integer gamma is NaN-safe here.
    return jnp.power(d, jnp.float32(gamma))


def _focal_loss_block(x, t, *, alpha, gamma, targets_binary):
    """Per-element focal loss; x is f32 logits, t is raw targets (f32 or int)."""
    if targets_binary:
        is_one = t == 1                                  # integer compare
        xt = jnp.where(is_one, x, jnp.float32(0.0))      # x * t for 0/1 labels
    else:
        tf = t.astype(jnp.float32)
        is_one = tf == jnp.float32(1.0)
        xt = x * tf
    alpha_t = jnp.where(is_one, jnp.float32(alpha), jnp.float32(1.0 - alpha))
    # pt uses raw logits, faithfully mirroring the reference PyTorch module;
    # (1 - pt) is folded into a single select.
    one_minus_pt = jnp.where(is_one, 1.0 - x, x)
    # BCEWithLogitsLoss(reduction='none'): max(x,0) - x*t + log1p(exp(-|x|))
    ce = jnp.maximum(x, 0.0) - xt + jnp.log1p(jnp.exp(-jnp.abs(x)))
    return alpha_t * _pow_modulator(one_minus_pt, gamma) * ce


def _focal_sum_kernel(pred_ref, tgt_ref, out_ref, acc_ref, *, alpha, gamma,
                      targets_binary, num_slices, tiles_per_slice,
                      mask_last_tile, last_tile_valid):
    i = pl.program_id(1)

    @pl.when(i == 0)
    def _():
        acc_ref[...] = jnp.zeros_like(acc_ref)

    x = pred_ref[...].astype(jnp.float32)
    loss = _focal_loss_block(x, tgt_ref[...], alpha=alpha, gamma=gamma,
                             targets_binary=targets_binary)

    if mask_last_tile:
        # Only the globally-last tile can hold invalid (ragged) data; every
        # other tile accumulates fully unmasked.
        is_last = jnp.logical_and(pl.program_id(0) == num_slices - 1,
                                  i == tiles_per_slice - 1)

        @pl.when(is_last)
        def _():
            rt, ln = loss.shape
            # Tile-local linear index: fits int32 regardless of global size.
            lidx = (jax.lax.broadcasted_iota(jnp.int32, (rt, ln), 0) * ln
                    + jax.lax.broadcasted_iota(jnp.int32, (rt, ln), 1))
            acc_ref[...] += jnp.where(lidx < last_tile_valid, loss, 0.0)

        @pl.when(jnp.logical_not(is_last))
        def _():
            acc_ref[...] += loss
    else:
        acc_ref[...] += loss

    @pl.when(i == tiles_per_slice - 1)
    def _():
        # Collapse the resident accumulator to a tiny (1, LANES) partial so HBM
        # writeback and the wrapper-side reduction are negligible.
        out_ref[0] = acc_ref[...].sum(axis=0, keepdims=True)


def _focal_map_kernel(pred_ref, tgt_ref, out_ref, *, alpha, gamma, targets_binary):
    x = pred_ref[...].astype(jnp.float32)
    out_ref[...] = _focal_loss_block(x, tgt_ref[...], alpha=alpha, gamma=gamma,
                                     targets_binary=targets_binary)


def _reduction_tiling(rows):
    """Pick (num_slices, tiles_per_slice, row_tile) with minimal row padding."""
    ns = _tensorcores_per_chip()
    if rows < ns * _ROW_ALIGN:
        ns = 1
    tiles = pl.cdiv(rows, ns * _MAX_ROW_TILE)
    if ns * tiles == 1:
        return 1, 1, rows            # single full-array block: zero padding
    row_tile = _round_up(pl.cdiv(rows, ns * tiles), _ROW_ALIGN)
    if (ns * tiles - 1) * row_tile >= rows:
        # Would create a fully out-of-range block; drop the cross-core split.
        ns = 1
        tiles = pl.cdiv(rows, _MAX_ROW_TILE)
        if tiles == 1:
            return 1, 1, rows
        row_tile = _round_up(pl.cdiv(rows, tiles), _ROW_ALIGN)
    return ns, tiles, row_tile


def focal_loss(predictions, targets, *, alpha=0.25, gamma=2, reduction="mean"):
    # [B,1,H,W] predictions with [B,H,W] targets -> squeeze the channel dim.
    if predictions.ndim == 4 and targets.ndim == 3 and predictions.shape[1] == 1:
        predictions = predictions[:, 0, :, :]
    assert predictions.shape == targets.shape, "predictions/targets shape mismatch"
    out_elem_shape = predictions.shape

    # Stream predictions in a native TPU float dtype (cast to f32 in-kernel).
    if predictions.dtype in (jnp.float32, jnp.bfloat16, jnp.float16):
        pred = predictions
    else:
        pred = predictions.astype(jnp.float32)

    # Targets: keep 0/1 labels as a narrow integer stream; the kernel compares
    # integers directly (no f32 cast of t, no x*t multiply).
    tdt = targets.dtype
    if jnp.issubdtype(tdt, jnp.floating):
        targets_binary = False
        tgt = targets if tdt in (jnp.float32, jnp.bfloat16, jnp.float16) \
            else targets.astype(jnp.float32)
    elif tdt == jnp.bool_:
        targets_binary = True
        # TODO(synk): a zero-copy bool->int8 reinterpret would drop ~2 B/elem of
        # pre-kernel HBM traffic, but is not reliably supported; use a convert.
        tgt = targets.astype(jnp.int8)
    else:
        targets_binary = True
        # TODO(synk): assumes integer labels are 0/1 (same as the reference).
        tgt = targets if tdt in (jnp.int8, jnp.int32, jnp.uint8, jnp.uint32) \
            else targets.astype(jnp.int32)

    n_elems = int(pred.size)
    alpha = float(alpha)
    g = float(gamma)
    # With integer gamma >= 1, zero-padded elements give exactly 0 loss
    # (pt = 1 -> modulator = 0), so they never need masking.
    zero_pad_is_free = g.is_integer() and g >= 1.0

    pred_flat = pred.reshape(-1)
    tgt_flat = tgt.reshape(-1)
    pad_elems = (-n_elems) % _LANES
    if pad_elems:
        # Rare path (n_elems not a multiple of 128): minimal zero pad so the
        # flat stream reshapes into a lane-dense [rows, 128] slab.
        pred_flat = jnp.pad(pred_flat, (0, pad_elems))
        tgt_flat = jnp.pad(tgt_flat, (0, pad_elems))
    rows = (n_elems + pad_elems) // _LANES
    pred2d = pred_flat.reshape(rows, _LANES)
    tgt2d = tgt_flat.reshape(rows, _LANES)

    if reduction not in ("mean", "sum"):
        # Unreduced per-element loss map: dedicated elementwise kernel with a
        # lane-dense output; ragged last block handled by the pipeline.
        if rows <= _MAX_ROW_TILE:
            row_tile, n_tiles = rows, 1
        else:
            row_tile, n_tiles = _MAX_ROW_TILE, pl.cdiv(rows, _MAX_ROW_TILE)
        kernel = functools.partial(_focal_map_kernel, alpha=alpha, gamma=gamma,
                                   targets_binary=targets_binary)
        tile_spec = pl.BlockSpec((row_tile, _LANES), lambda i: (i, 0))
        loss2d = pl.pallas_call(
            kernel,
            out_shape=jax.ShapeDtypeStruct((rows, _LANES), jnp.float32),
            grid_spec=pltpu.PrefetchScalarGridSpec(
                num_scalar_prefetch=0,
                grid=(n_tiles,),
                in_specs=[tile_spec, tile_spec],
                out_specs=pl.BlockSpec((row_tile, _LANES), lambda i: (i, 0)),
            ),
            compiler_params=pltpu.CompilerParams(
                dimension_semantics=("parallel",)),
        )(pred2d, tgt2d)
        if pad_elems:
            return loss2d.reshape(-1)[:n_elems].reshape(out_elem_shape)
        return loss2d.reshape(out_elem_shape)

    num_slices, tiles_per_slice, row_tile = _reduction_tiling(rows)
    covered_elems = num_slices * tiles_per_slice * row_tile * _LANES
    valid_thresh = rows * _LANES if zero_pad_is_free else n_elems
    mask_last_tile = covered_elems > valid_thresh
    last_tile_valid = (valid_thresh
                       - (num_slices * tiles_per_slice - 1) * row_tile * _LANES)

    kernel = functools.partial(
        _focal_sum_kernel, alpha=alpha, gamma=gamma,
        targets_binary=targets_binary, num_slices=num_slices,
        tiles_per_slice=tiles_per_slice, mask_last_tile=mask_last_tile,
        last_tile_valid=last_tile_valid)

    in_spec = pl.BlockSpec((row_tile, _LANES),
                           lambda s, i: (s * tiles_per_slice + i, 0))
    partials = pl.pallas_call(
        kernel,
        out_shape=jax.ShapeDtypeStruct((num_slices, 1, _LANES), jnp.float32),
        grid_spec=pltpu.PrefetchScalarGridSpec(
            num_scalar_prefetch=0,
            grid=(num_slices, tiles_per_slice),
            in_specs=[in_spec, in_spec],
            out_specs=pl.BlockSpec((1, 1, _LANES), lambda s, i: (s, 0, 0)),
            scratch_shapes=[pltpu.VMEM((row_tile, _LANES), jnp.float32)],
        ),
        compiler_params=pltpu.CompilerParams(
            dimension_semantics=("parallel", "arbitrary")),
    )(pred2d, tgt2d)

    total = jnp.sum(partials)
    if reduction == "mean":
        return total / jnp.float32(n_elems)
    return total  # "sum"


def _focal_loss_ref(predictions, targets, *, alpha=0.25, gamma=2, reduction="mean"):
    # Pure-JAX reference matching the PyTorch module semantics.
    if predictions.ndim == 4 and targets.ndim == 3 and predictions.shape[1] == 1:
        predictions = predictions[:, 0, :, :]
    x = predictions.astype(jnp.float32)
    t = targets.astype(jnp.float32)
    is_one = t == 1.0
    a = jnp.where(is_one, alpha, 1.0 - alpha)
    pt = jnp.where(is_one, x, 1.0 - x)
    ce = jnp.maximum(x, 0.0) - x * t + jnp.log1p(jnp.exp(-jnp.abs(x)))
    loss = a * jnp.power(1.0 - pt, gamma) * ce
    if reduction == "mean":
        return loss.mean()
    if reduction == "sum":
        return loss.sum()
    return loss


if __name__ == "__main__":
    key = jax.random.PRNGKey(0)
    k1, k2, k3, k4 = jax.random.split(key, 4)

    # Primary small example: [B,C,H,W] logits with float 0/1 targets.
    B, C, H, W = 2, 4, 16, 16
    predictions = jax.random.normal(k1, (B, C, H, W), dtype=jnp.float32)  # logits
    targets = jax.random.bernoulli(k2, 0.3, (B, C, H, W)).astype(jnp.float32)

    out = jax.block_until_ready(
        focal_loss(predictions, targets, alpha=0.25, gamma=2, reduction="mean"))
    ref = _focal_loss_ref(predictions, targets, alpha=0.25, gamma=2, reduction="mean")
    assert jnp.allclose(out, ref, rtol=1e-5, atol=1e-6), (out, ref)

    # 'sum' reduction.
    out_sum = jax.block_until_ready(focal_loss(predictions, targets, reduction="sum"))
    ref_sum = _focal_loss_ref(predictions, targets, reduction="sum")
    assert jnp.allclose(out_sum, ref_sum, rtol=1e-5, atol=1e-3), (out_sum, ref_sum)

    # [B,1,H,W] predictions vs [B,H,W] bool targets (narrow int8 target stream).
    pred1 = predictions[:, :1, :, :]
    tgt_bool = jax.random.bernoulli(k3, 0.3, (B, H, W))
    out_sq = jax.block_until_ready(focal_loss(pred1, tgt_bool))
    ref_sq = _focal_loss_ref(pred1, tgt_bool)
    assert jnp.allclose(out_sq, ref_sq, rtol=1e-5, atol=1e-6), (out_sq, ref_sq)

    # reduction='none': per-element loss map (no-pad fast path).
    out_map = jax.block_until_ready(focal_loss(predictions, targets, reduction="none"))
    ref_map = _focal_loss_ref(predictions, targets, reduction="none")
    assert out_map.shape == ref_map.shape
    assert jnp.allclose(out_map, ref_map, rtol=1e-5, atol=1e-6)

    # Non-128-multiple element count exercises the minimal zero-pad path.
    pred_odd = jax.random.normal(k4, (3, 5, 7), dtype=jnp.float32)
    tgt_odd = jax.random.bernoulli(k1, 0.5, (3, 5, 7)).astype(jnp.float32)
    out_odd = jax.block_until_ready(focal_loss(pred_odd, tgt_odd, reduction="mean"))
    ref_odd = _focal_loss_ref(pred_odd, tgt_odd, reduction="mean")
    assert jnp.allclose(out_odd, ref_odd, rtol=1e-5, atol=1e-6), (out_odd, ref_odd)

    # Moderate size: multiple tiles, ragged last block mask, int8 target stream.
    shape = (4, 4, 128, 130)
    pred_big = jax.random.normal(k4, shape, dtype=jnp.float32) * 2.0
    tgt_big = jax.random.bernoulli(k2, 0.4, shape)          # bool -> int8 stream
    out_big = jax.block_until_ready(focal_loss(pred_big, tgt_big, reduction="mean"))
    ref_big = _focal_loss_ref(pred_big, tgt_big, reduction="mean")
    assert jnp.allclose(out_big, ref_big, rtol=1e-4, atol=1e-6), (out_big, ref_big)

    print("KERNEL_OK")
</pallas_src>

<mosaic_0001>
module attributes {stable_mosaic.version = 11 : i64} {
  func.func @_focal_sum_kernel(%arg0: i32, %arg1: i32, %arg2: memref<16x128xf32, #tpu.memory_space<vmem>>, %arg3: memref<16x128xf32, #tpu.memory_space<vmem>>, %arg4: memref<1x1x128xf32, #tpu.memory_space<vmem>>, %arg5: memref<16x128xf32, #tpu.memory_space<vmem>>) attributes {dimension_semantics = [#tpu.dimension_semantics<parallel>, #tpu.dimension_semantics<arbitrary>], iteration_bounds = array<i64: 1, 1>, scalar_prefetch = 0 : i64, scratch_operands = 1 : i64, tpu.core_type = #tpu.core_type<tc>, window_params = [{transform_indices = @transform_0, window_bounds = array<i64: 16, 128>}, {transform_indices = @transform_1, window_bounds = array<i64: 16, 128>}, {transform_indices = @transform_2, window_bounds = array<i64: 1, 1, 128>}]} {
    %c0_i32 = arith.constant 0 : i32
    %0 = arith.cmpi eq, %arg1, %c0_i32 : i32
    %1 = arith.extui %0 : i1 to i32
    %c0_i32_0 = arith.constant 0 : i32
    %2 = arith.cmpi ne, %1, %c0_i32_0 : i32
    scf.if %2 {
      %cst_15 = arith.constant 0.000000e+00 : f32
      %32 = vector.broadcast %cst_15 : f32 to vector<16x128xf32>
      %c0_16 = arith.constant 0 : index
      %c0_17 = arith.constant 0 : index
      %33 = vector.load %arg5[%c0_16, %c0_17] : memref<16x128xf32, #tpu.memory_space<vmem>>, vector<16x128xf32>
      tpu.vector_store %arg5[%c0_16, %c0_17], %32 {strides = array<i32>} : memref<16x128xf32, #tpu.memory_space<vmem>>, vector<16x128xf32>,
    } else {
    }
    %c0 = arith.constant 0 : index
    %c0_1 = arith.constant 0 : index
    %3 = vector.load %arg2[%c0, %c0_1] : memref<16x128xf32, #tpu.memory_space<vmem>>, vector<16x128xf32>
    %c0_2 = arith.constant 0 : index
    %c0_3 = arith.constant 0 : index
    %4 = vector.load %arg3[%c0_2, %c0_3] : memref<16x128xf32, #tpu.memory_space<vmem>>, vector<16x128xf32>
    %cst = arith.constant 1.000000e+00 : f32
    %5 = vector.broadcast %cst : f32 to vector<16x128xf32>
    %6 = arith.cmpf oeq, %4, %5 : vector<16x128xf32>
    %7 = arith.mulf %3, %4 : vector<16x128xf32>
    %cst_4 = arith.constant 2.500000e-01 : f32
    %cst_5 = arith.constant 7.500000e-01 : f32
    %8 = vector.broadcast %cst_4 : f32 to vector<16x128xf32>
    %9 = vector.broadcast %cst_5 : f32 to vector<16x128xf32>
    %10 = arith.select %6, %8, %9 : vector<16x128xi1>, vector<16x128xf32>
    %cst_6 = arith.constant 1.000000e+00 : f32
    %11 = vector.broadcast %cst_6 : f32 to vector<16x128xf32>
    %12 = arith.subf %11, %3 : vector<16x128xf32>
    %13 = arith.select %6, %12, %3 : vector<16x128xi1>, vector<16x128xf32>
    %cst_7 = arith.constant 0.000000e+00 : f32
    %14 = vector.broadcast %cst_7 : f32 to vector<16x128xf32>
    %15 = arith.maximumf %3, %14 : vector<16x128xf32>
    %16 = arith.subf %15, %7 : vector<16x128xf32>
    %17 = math.absf %3 : vector<16x128xf32>
    %cst_8 = arith.constant 0.000000e+00 : f32
    %18 = vector.broadcast %cst_8 : f32 to vector<16x128xf32>
    %19 = arith.subf %18, %17 : vector<16x128xf32>
    %20 = math.exp %19 : vector<16x128xf32>
    %21 = math.log1p %20 : vector<16x128xf32>
    %22 = arith.addf %16, %21 : vector<16x128xf32>
    %23 = arith.mulf %13, %13 : vector<16x128xf32>
    %24 = arith.mulf %10, %23 : vector<16x128xf32>
    %25 = arith.mulf %24, %22 : vector<16x128xf32>
    %c0_9 = arith.constant 0 : index
    %c0_10 = arith.constant 0 : index
    %26 = vector.load %arg5[%c0_9, %c0_10] : memref<16x128xf32, #tpu.memory_space<vmem>>, vector<16x128xf32>
    %27 = arith.addf %26, %25 : vector<16x128xf32>
    %c0_11 = arith.constant 0 : index
    %c0_12 = arith.constant 0 : index
    %28 = vector.load %arg5[%c0_11, %c0_12] : memref<16x128xf32, #tpu.memory_space<vmem>>, vector<16x128xf32>
    tpu.vector_store %arg5[%c0_11, %c0_12], %27 {strides = array<i32>} : memref<16x128xf32, #tpu.memory_space<vmem>>, vector<16x128xf32>,
    %c0_i32_13 = arith.constant 0 : i32
    %29 = arith.cmpi eq, %arg1, %c0_i32_13 : i32
    %30 = arith.extui %29 : i1 to i32
    %c0_i32_14 = arith.constant 0 : i32
    %31 = arith.cmpi ne, %30, %c0_i32_14 : i32
    scf.if %31 {
      %c0_15 = arith.constant 0 : index
      %c0_16 = arith.constant 0 : index
      %32 = vector.load %arg5[%c0_15, %c0_16] : memref<16x128xf32, #tpu.memory_space<vmem>>, vector<16x128xf32>
      %cst_17 = arith.constant dense<0.000000e+00> : vector<128xf32>
      %33 = vector.multi_reduction <add>, %32, %cst_17 [0] : vector<16x128xf32> to vector<128xf32>
      %34 = vector.shape_cast %33 : vector<128xf32> to vector<1x128xf32>
      %c0_18 = arith.constant 0 : index
      %c0_19 = arith.constant 0 : index
      %c0_20 = arith.constant 0 : index
      %35 = vector.load %arg4[%c0_18, %c0_19, %c0_20] : memref<1x1x128xf32, #tpu.memory_space<vmem>>, vector<1x1x128xf32>
      %36 = vector.shape_cast %35 : vector<1x1x128xf32> to vector<1x128xf32>
      %37 = vector.shape_cast %34 : vector<1x128xf32> to vector<1x1x128xf32>
      tpu.vector_store %arg4[%c0_18, %c0_19, %c0_20], %37 {strides = array<i32>} : memref<1x1x128xf32, #tpu.memory_space<vmem>>, vector<1x1x128xf32>,
    } else {
    }
    return
  }
  func.func @transform_0(%arg0: i32, %arg1: i32) -> (i32, i32) {
    %c1_i32 = arith.constant 1 : i32
    %0 = arith.muli %arg0, %c1_i32 : i32
    %1 = arith.addi %0, %arg1 : i32
    %c0_i32 = arith.constant 0 : i32
    %c0_i32_0 = arith.constant 0 : i32
    return %1, %c0_i32 : i32, i32
  }
  func.func @transform_1(%arg0: i32, %arg1: i32) -> (i32, i32) {
    %c1_i32 = arith.constant 1 : i32
    %0 = arith.muli %arg0, %c1_i32 : i32
    %1 = arith.addi %0, %arg1 : i32
    %c0_i32 = arith.constant 0 : i32
    %c0_i32_0 = arith.constant 0 : i32
    return %1, %c0_i32 : i32, i32
  }
  func.func @transform_2(%arg0: i32, %arg1: i32) -> (i32, i32, i32) {
    %c0_i32 = arith.constant 0 : i32
    %c0_i32_0 = arith.constant 0 : i32
    %c0_i32_1 = arith.constant 0 : i32
    return %arg0, %c0_i32, %c0_i32_0 : i32, i32, i32
  }
}

</mosaic_0001>

<bundles_post_ra>
// kernel: tpu_custom_call.1
= control target key start
LH: loop header
LB: loop body
LE: loop exit
PB: predicated region body
PF: predicated region fallthrough
CT: control target
= control target key end

     0   :  { %7 = vsyncpa [#allocation4], 0  ;;  %s277_s0 = inlined_call_operand.hbm [shape: f32[16,128], index: 0, kind: input, shape index: {}]   ;;  %s278_s1 = inlined_call_operand.hbm [shape: f32[16,128], index: 1, kind: input, shape index: {}]   ;;  %s279_s2 = inlined_call_operand.hbm [shape: f32[1,1,128], index: 2, kind: output, shape index: {}]  }
   0x1   :  { %8 = vsyncpa [#allocation7], 0 }
   0x2   :  { %9 = vsyncpa [#allocation5], 0  ;;  %s18_s11 = sshll.u32 %s277_s0, 4  ;;  %s243_s12 = smov [#allocation3]   ;;  %s19_s11 = int_to_ptr.hbm [resolvable:$true] %s18_s11 }
   0x3   :  { %s20_s13 = sshll.u32 %s243_s12, 4  ;;  %s35_s16 = sshll.u32 %s278_s1, 4  ;;  %s21_s13 = int_to_ptr.vmem [resolvable:$true] %s20_s13  ;;  %s36_s16 = int_to_ptr.hbm [resolvable:$true] %s35_s16 }
   0x4   :  { %s244_s17 = smov 128   ;;  %s245_s18 = smov 8  }
   0x5   :  { %26 = dma.hbm_to_vmem [thread:$0]  %s19_s11, 256, %s21_s13, [#allocation4], %s244_s17, %s244_s17, %s245_s18  }
   0x6   :  { %s246_s19 = smov [#allocation6]  }
   0x7   :  { %s37_s20 = sshll.u32 %s246_s19, 4  ;;  %s38_s20 = int_to_ptr.vmem [resolvable:$true] %s37_s20 }
   0x8   :  { %43 = dma.hbm_to_vmem [thread:$0]  %s36_s16, 256, %s38_s20, [#allocation7], %s244_s17, %s244_s17, %s245_s18  }
   0x9   :  { %237 = dma.done.wait [#allocation4], 256  }
   0xa   :  { %238 = vsyncadd [#allocation4], 4294967040 }
   0xb   :  { %239 = dma.done.wait [#allocation7], 256  }
   0xc   :  { %240 = vsyncadd [#allocation7], 4294967040  ;;  %v62_v0 = vld [vmem:[#allocation3] sm:$0xff]  ;;  %v63_v1 = vld [vmem:[#allocation3 + $0x8] sm:$0xff]  ;;  %v247_v29 = vmov 0.75   ;;  %s248_s0 = smov [#allocation8]  }
   0xd   :  { %v80_v2 = vand.u32 2147483647, %v62_v0  ;;  %v81_v3 = vand.u32 2147483647, %v63_v1  ;;  %v64_v8 = vld [vmem:[#allocation6] sm:$0xff]  ;;  %v65_v9 = vld [vmem:[#allocation6 + $0x8] sm:$0xff] }
   0xe   :  { %v72_v11 = vsub.f32 1.0, %v62_v0  ;;  %vm66_vm0 = vcmp.eq.f32.partialorder %v64_v8, 1.0  ;;  %v73_v13 = vsub.f32 1.0, %v63_v1  ;;  %vm67_vm1 = vcmp.eq.f32.partialorder %v65_v9, 1.0  ;;  %s138_s1 = sshll.u32 %s248_s0, 4  ;;  %s140_s23 = sshll.u32 %s279_s2, 4  ;;  %s139_s1 = int_to_ptr.vmem [resolvable:$true] %s138_s1  ;;  %s141_s23 = int_to_ptr.hbm [resolvable:$true] %s140_s23 }
   0xf   :  { %v82_v4 = vsub.f32 0.0, %v80_v2  ;;  %v83_v5 = vsub.f32 0.0, %v81_v3  ;;  %v68_v18 = vmul.f32 %v64_v8, %v62_v0  ;;  %v76_v22 = vmax.f32 %v62_v0, 0.0 }
  0x10   :  { %v74_v19 = vsel %vm66_vm0, %v72_v11, %v62_v0  ;;  %v75_v21 = vsel %vm67_vm1, %v73_v13, %v63_v1  ;;  %v69_v25 = vmul.f32 %v65_v9, %v63_v1  ;;  %v77_v26 = vmax.f32 %v63_v1, 0.0 }
  0x11   :  { %v84_v6 = vmul.f32 1.442695, %v82_v4  ;;  %v86_v7 = vmul.f32 1.442695, %v83_v5  ;;  %v108_v28 = vmul.f32 %v74_v19, %v74_v19  ;;  %v70_v30 = vsel %vm66_vm0, 0.25, %v247_v29 }
  0x12   :  { %v109_v32 = vmul.f32 %v75_v21, %v75_v21  ;;  %v71_v34 = vsel %vm67_vm1, 0.25, %v247_v29  ;;  %v78_v35 = vsub.f32 %v76_v22, %v68_v18  ;;  %v79_v38 = vsub.f32 %v77_v26, %v69_v25 }
  0x13   :  { %157 = vpow2.f32 %v84_v6  ;;  %v110_v41 = vmul.f32 %v108_v28, %v70_v30 }
  0x14   :  { %159 = vpow2.f32 %v86_v7  ;;  %v111_v43 = vmul.f32 %v109_v32, %v71_v34 }
  0x19   :  { %v158_v10 = vpop.eup %157 }
  0x1a   :  { %v160_v12 = vpop.eup %159  ;;  %v88_v14 = vadd.f32 1.0, %v158_v10  ;;  %v91_v15 = vmul.f32 -0.5, %v158_v10  ;;  %v94_v23 = vand.u32 2147483647, %v158_v10 }
  0x1b   :  { %v97_v16 = vadd.f32 1.0, %v160_v12  ;;  %v100_v17 = vmul.f32 -0.5, %v160_v12  ;;  %v103_v27 = vand.u32 2147483647, %v160_v12 }
  0x1c   :  { %161 = vlog2.f32 %v88_v14  ;;  %v92_v20 = vadd.f32 1.0, %v91_v15  ;;  %vm95_vm2 = vcmp.lt.f32.partialorder %v94_v23, 0.0004427343 }
  0x1d   :  { %163 = vlog2.f32 %v97_v16  ;;  %v101_v24 = vadd.f32 1.0, %v100_v17  ;;  %vm104_vm3 = vcmp.lt.f32.partialorder %v103_v27, 0.0004427343 }
  0x1e   :  { %v93_v31 = vmul.f32 %v158_v10, %v92_v20 }
  0x1f   :  { %v102_v36 = vmul.f32 %v160_v12, %v101_v24 }
  0x22   :  { %v162_v33 = vpop.eup %161 }
  0x23   :  { %v164_v37 = vpop.eup %163  ;;  %v90_v39 = vmul.f32 0.6931472, %v162_v33 }
  0x24   :  { %v99_v40 = vmul.f32 0.6931472, %v164_v37 }
  0x25   :  { %v96_v42 = vsel %vm95_vm2, %v93_v31, %v90_v39 }
  0x26   :  { %v105_v44 = vsel %vm104_vm3, %v102_v36, %v99_v40  ;;  %v106_v45 = vadd.f32 %v96_v42, %v78_v35 }
  0x27   :  { %v107_v46 = vadd.f32 %v105_v44, %v79_v38 }
  0x28   :  { %v112_v47 = vmul.f32 %v110_v41, %v106_v45 }
  0x29   :  { %v113_v48 = vmul.f32 %v111_v43, %v107_v46 }
  0x2b   :  { %v125_v49 = vadd.f32 %v113_v48, %v112_v47 }
  0x2d   :  { %v126_v50 = vrot.slane %v125_v49, 4 }
  0x2f   :  { %v127_v51 = vadd.f32 %v126_v50, %v125_v49 }
  0x31   :  { %v128_v52 = vrot.slane %v127_v51, 2 }
  0x33   :  { %v129_v53 = vadd.f32 %v128_v52, %v127_v51 }
  0x35   :  { %v130_v54 = vrot.slane %v129_v53, 1 }
  0x37   :  { %v131_v55 = vadd.f32 %v130_v54, %v129_v53 }
  0x39   :  { %132 = vst [vmem:[#allocation8] sm:$0x1] %v131_v55 }
  0x3a   :  { %143 = dma.vmem_to_hbm [thread:$0]  %s139_s1, 16, %s141_s23, [#allocation5]  }
  0x3b   :  { %241 = dma.done.wait [#allocation5], 16  }
  0x3c   :  { %242 = vsyncadd [#allocation5], 4294967280 }
  0x3d   :  { %148 = vsyncpa [#allocation4], 1 }
  0x3e   :  { %149 = vsyncpa [#allocation7], 1 }
  0x3f   :  { %150 = vsyncpa [#allocation5], 1 }

</bundles_post_ra>
